<compile_context>
chip_gen: v5e
topology: v5e:2x2
jax: 0.10.0
libtpu: 0.0.40
codegen_flags: <defaults>
</compile_context>

<pallas_src>
import functools

import jax
import jax.numpy as jnp
from jax.experimental import pallas as pl


def _mlp_decoder_kernel(
    x_ref,
    w1_ref, b1_ref, g1_ref, be1_ref,
    w2_ref, b2_ref, g2_ref, be2_ref,
    w3_ref, b3_ref, g3_ref, be3_ref,
    w4_ref, b4_ref,
    o_ref,
    *, eps, n_valid,
):
    """Fully fused MamlMLPDecoder forward on one TensorCore.

    x_ref: (Bp, in_dim) with Bp = batch padded up to a multiple of 8;
           rows >= n_valid are zero padding and are excluded from BN stats.
    wK_ref: (in, out) weight for layer K, bK_ref: (1, out) bias,
    gK_ref / beK_ref: (1, out) BatchNorm gamma / beta.
    o_ref: (Bp, binary).
    """
    x = x_ref[...]
    rows = x.shape[0]

    # Row-validity mask (only needed when the batch was padded); computed once
    # and reused by all three BatchNorm reductions.
    row_ids = jax.lax.broadcasted_iota(jnp.int32, (rows, 1), 0)
    mask = (row_ids < n_valid).astype(jnp.float32)
    inv_n = 1.0 / float(n_valid)

    def linear_relu_bn(h, w_ref, b_ref, gamma_ref, beta_ref):
        # Linear (MXU) + bias.
        y = jnp.dot(h, w_ref[...], preferred_element_type=jnp.float32)
        y = y + b_ref[...]
        # ReLU (VPU).
        g = jnp.maximum(y, 0.0)
        # BatchNorm1d, training mode: biased batch stats over valid rows.
        mean = jnp.sum(g * mask, axis=0, keepdims=True) * inv_n
        diff = g - mean
        var = jnp.sum(diff * diff * mask, axis=0, keepdims=True) * inv_n
        # Fold affine: one mul + one add per element.
        scale = gamma_ref[...] * jax.lax.rsqrt(var + eps)
        shift = beta_ref[...] - mean * scale
        return g * scale + shift

    h = linear_relu_bn(x, w1_ref, b1_ref, g1_ref, be1_ref)
    h = linear_relu_bn(h, w2_ref, b2_ref, g2_ref, be2_ref)
    h = linear_relu_bn(h, w3_ref, b3_ref, g3_ref, be3_ref)
    # Final projection (no activation / no BN).
    o_ref[...] = (
        jnp.dot(h, w4_ref[...], preferred_element_type=jnp.float32) + b4_ref[...]
    )


def maml_mlp_decoder_forward(x, params, *, eps=0.1):
    """x: (B, in_dim) float32  ->  (B, binary) float32."""
    (w1, b1, g1, be1,
     w2, b2, g2, be2,
     w3, b3, g3, be3,
     w4, b4) = params

    B, in_dim = x.shape
    hidden = w1.shape[1]
    out_dim = w3.shape[1]
    binary = w4.shape[1]

    # Pad the batch to a multiple of 8 (sublane alignment).  BN stats inside
    # the kernel are masked to the true batch size, so padding is inert.
    Bp = ((B + 7) // 8) * 8
    if Bp != B:
        x = jnp.pad(x, ((0, Bp - B), (0, 0)))

    kernel = functools.partial(_mlp_decoder_kernel, eps=eps, n_valid=B)

    def full(shape):
        return pl.BlockSpec(shape, lambda: (0,) * len(shape))

    out = pl.pallas_call(
        kernel,
        out_shape=jax.ShapeDtypeStruct((Bp, binary), jnp.float32),
        in_specs=[
            full((Bp, in_dim)),
            full((in_dim, hidden)), full((1, hidden)), full((1, hidden)), full((1, hidden)),
            full((hidden, hidden)), full((1, hidden)), full((1, hidden)), full((1, hidden)),
            full((hidden, out_dim)), full((1, out_dim)), full((1, out_dim)), full((1, out_dim)),
            full((out_dim, binary)), full((1, binary)),
        ],
        out_specs=full((Bp, binary)),
    )(x, w1, b1, g1, be1, w2, b2, g2, be2, w3, b3, g3, be3, w4, b4)

    return out[:B]


def init_params(key, in_dim, hidden_dim, out_dim, binary=1):
    """Deterministic synthetic parameters matching the PyTorch module shapes.

    PyTorch Linear weight is (out, in); we store the transposed (in, out).
    BatchNorm affine params at default init: gamma=1, beta=0.
    """
    k1, k2, k3, k4, k5, k6, k7, k8 = jax.random.split(key, 8)

    def linear(kw, kb, fan_in, fan_out):
        bound = 1.0 / jnp.sqrt(fan_in)
        w = jax.random.uniform(kw, (fan_in, fan_out), jnp.float32, -bound, bound)
        b = jax.random.uniform(kb, (1, fan_out), jnp.float32, -bound, bound)
        return w, b

    w1, b1 = linear(k1, k2, in_dim, hidden_dim)
    w2, b2 = linear(k3, k4, hidden_dim, hidden_dim)
    w3, b3 = linear(k5, k6, hidden_dim, out_dim)
    w4, b4 = linear(k7, k8, out_dim, binary)

    g1 = jnp.ones((1, hidden_dim), jnp.float32)
    be1 = jnp.zeros((1, hidden_dim), jnp.float32)
    g2 = jnp.ones((1, hidden_dim), jnp.float32)
    be2 = jnp.zeros((1, hidden_dim), jnp.float32)
    g3 = jnp.ones((1, out_dim), jnp.float32)
    be3 = jnp.zeros((1, out_dim), jnp.float32)

    return (w1, b1, g1, be1, w2, b2, g2, be2, w3, b3, g3, be3, w4, b4)


def _reference_forward(x, params, *, eps=0.1):
    """Pure-JAX reference of the PyTorch forward (training-mode BN)."""
    (w1, b1, g1, be1, w2, b2, g2, be2, w3, b3, g3, be3, w4, b4) = params

    def block(h, w, b, gamma, beta):
        y = jnp.maximum(h @ w + b, 0.0)
        mean = jnp.mean(y, axis=0, keepdims=True)
        var = jnp.mean((y - mean) ** 2, axis=0, keepdims=True)
        return (y - mean) * jax.lax.rsqrt(var + eps) * gamma + beta

    h = block(x, w1, b1, g1, be1)
    h = block(h, w2, b2, g2, be2)
    h = block(h, w3, b3, g3, be3)
    return h @ w4 + b4


if __name__ == "__main__":
    key = jax.random.PRNGKey(0)
    k_x, k_p = jax.random.split(key)

    # Small shapes consistent with the module: (batch, in_dim) input.
    B, IN_DIM, HIDDEN_DIM, OUT_DIM, BINARY = 10, 32, 64, 32, 1

    x = jax.random.normal(k_x, (B, IN_DIM), jnp.float32)
    params = init_params(k_p, IN_DIM, HIDDEN_DIM, OUT_DIM, BINARY)

    out = jax.jit(maml_mlp_decoder_forward)(x, params)
    out = jax.block_until_ready(out)

    assert out.shape == (B, BINARY), out.shape
    assert jnp.isfinite(out).all()

    ref = _reference_forward(x, params)
    assert jnp.allclose(out, ref, rtol=1e-3, atol=1e-3), (
        float(jnp.max(jnp.abs(out - ref)))
    )

    print("KERNEL_OK")
</pallas_src>

<mosaic_0001>
module attributes {stable_mosaic.version = 11 : i64} {
  func.func @_mlp_decoder_kernel(%arg0: memref<16x32xf32, #tpu.memory_space<vmem>>, %arg1: memref<32x64xf32, #tpu.memory_space<vmem>>, %arg2: memref<1x64xf32, #tpu.memory_space<vmem>>, %arg3: memref<1x64xf32, #tpu.memory_space<vmem>>, %arg4: memref<1x64xf32, #tpu.memory_space<vmem>>, %arg5: memref<64x64xf32, #tpu.memory_space<vmem>>, %arg6: memref<1x64xf32, #tpu.memory_space<vmem>>, %arg7: memref<1x64xf32, #tpu.memory_space<vmem>>, %arg8: memref<1x64xf32, #tpu.memory_space<vmem>>, %arg9: memref<64x32xf32, #tpu.memory_space<vmem>>, %arg10: memref<1x32xf32, #tpu.memory_space<vmem>>, %arg11: memref<1x32xf32, #tpu.memory_space<vmem>>, %arg12: memref<1x32xf32, #tpu.memory_space<vmem>>, %arg13: memref<32x1xf32, #tpu.memory_space<vmem>>, %arg14: memref<1x1xf32, #tpu.memory_space<vmem>>, %arg15: memref<16x1xf32, #tpu.memory_space<vmem>>) attributes {dimension_semantics = [], scalar_prefetch = 0 : i64, scratch_operands = 0 : i64, tpu.core_type = #tpu.core_type<tc>} {
    %c0 = arith.constant 0 : index
    %c0_0 = arith.constant 0 : index
    %0 = vector.load %arg0[%c0, %c0_0] : memref<16x32xf32, #tpu.memory_space<vmem>>, vector<16x32xf32>
    %1 = tpu.iota {dimensions = array<i32: 0>} : vector<16x1xi32>
    %c10_i32 = arith.constant 10 : i32
    %2 = vector.broadcast %c10_i32 : i32 to vector<16x1xi32>
    %3 = arith.cmpi slt, %1, %2 : vector<16x1xi32>
    %4 = arith.extui %3 : vector<16x1xi1> to vector<16x1xi32>
    %5 = arith.sitofp %4 : vector<16x1xi32> to vector<16x1xf32>
    %c0_1 = arith.constant 0 : index
    %c0_2 = arith.constant 0 : index
    %6 = vector.load %arg1[%c0_1, %c0_2] : memref<32x64xf32, #tpu.memory_space<vmem>>, vector<32x64xf32>
    %cst = arith.constant dense<0.000000e+00> : vector<16x64xf32>
    %7 = tpu.matmul %0, %6, %cst {dimension_numbers = #tpu.dot_dimension_numbers<[1], [0], [0], [1], [0, 0, 1, 1], [], []>} : vector<16x32xf32>, vector<32x64xf32>, vector<16x64xf32> -> vector<16x64xf32>
    %c0_3 = arith.constant 0 : index
    %c0_4 = arith.constant 0 : index
    %8 = vector.load %arg2[%c0_3, %c0_4] : memref<1x64xf32, #tpu.memory_space<vmem>>, vector<1x64xf32>
    %9 = vector.broadcast %8 : vector<1x64xf32> to vector<16x64xf32>
    %10 = arith.addf %7, %9 : vector<16x64xf32>
    %cst_5 = arith.constant 0.000000e+00 : f32
    %11 = vector.broadcast %cst_5 : f32 to vector<16x64xf32>
    %12 = arith.maximumf %10, %11 : vector<16x64xf32>
    %13 = vector.broadcast %5 : vector<16x1xf32> to vector<16x64xf32>
    %14 = arith.mulf %12, %13 : vector<16x64xf32>
    %cst_6 = arith.constant dense<0.000000e+00> : vector<64xf32>
    %15 = vector.multi_reduction <add>, %14, %cst_6 [0] : vector<16x64xf32> to vector<64xf32>
    %16 = vector.shape_cast %15 : vector<64xf32> to vector<1x64xf32>
    %cst_7 = arith.constant 1.000000e-01 : f32
    %17 = vector.broadcast %cst_7 : f32 to vector<1x64xf32>
    %18 = arith.mulf %16, %17 : vector<1x64xf32>
    %19 = vector.broadcast %18 : vector<1x64xf32> to vector<16x64xf32>
    %20 = arith.subf %12, %19 : vector<16x64xf32>
    %21 = arith.mulf %20, %20 : vector<16x64xf32>
    %22 = vector.broadcast %5 : vector<16x1xf32> to vector<16x64xf32>
    %23 = arith.mulf %21, %22 : vector<16x64xf32>
    %cst_8 = arith.constant dense<0.000000e+00> : vector<64xf32>
    %24 = vector.multi_reduction <add>, %23, %cst_8 [0] : vector<16x64xf32> to vector<64xf32>
    %25 = vector.shape_cast %24 : vector<64xf32> to vector<1x64xf32>
    %cst_9 = arith.constant 1.000000e-01 : f32
    %26 = vector.broadcast %cst_9 : f32 to vector<1x64xf32>
    %27 = arith.mulf %25, %26 : vector<1x64xf32>
    %c0_10 = arith.constant 0 : index
    %c0_11 = arith.constant 0 : index
    %28 = vector.load %arg3[%c0_10, %c0_11] : memref<1x64xf32, #tpu.memory_space<vmem>>, vector<1x64xf32>
    %cst_12 = arith.constant 1.000000e-01 : f32
    %29 = vector.broadcast %cst_12 : f32 to vector<1x64xf32>
    %30 = arith.addf %27, %29 : vector<1x64xf32>
    %31 = math.rsqrt %30 : vector<1x64xf32>
    %32 = arith.mulf %28, %31 : vector<1x64xf32>
    %c0_13 = arith.constant 0 : index
    %c0_14 = arith.constant 0 : index
    %33 = vector.load %arg4[%c0_13, %c0_14] : memref<1x64xf32, #tpu.memory_space<vmem>>, vector<1x64xf32>
    %34 = arith.mulf %18, %32 : vector<1x64xf32>
    %35 = arith.subf %33, %34 : vector<1x64xf32>
    %36 = vector.broadcast %32 : vector<1x64xf32> to vector<16x64xf32>
    %37 = arith.mulf %12, %36 : vector<16x64xf32>
    %38 = vector.broadcast %35 : vector<1x64xf32> to vector<16x64xf32>
    %39 = arith.addf %37, %38 : vector<16x64xf32>
    %c0_15 = arith.constant 0 : index
    %c0_16 = arith.constant 0 : index
    %40 = vector.load %arg5[%c0_15, %c0_16] : memref<64x64xf32, #tpu.memory_space<vmem>>, vector<64x64xf32>
    %cst_17 = arith.constant dense<0.000000e+00> : vector<16x64xf32>
    %41 = tpu.matmul %39, %40, %cst_17 {dimension_numbers = #tpu.dot_dimension_numbers<[1], [0], [0], [1], [0, 0, 1, 1], [], []>} : vector<16x64xf32>, vector<64x64xf32>, vector<16x64xf32> -> vector<16x64xf32>
    %c0_18 = arith.constant 0 : index
    %c0_19 = arith.constant 0 : index
    %42 = vector.load %arg6[%c0_18, %c0_19] : memref<1x64xf32, #tpu.memory_space<vmem>>, vector<1x64xf32>
    %43 = vector.broadcast %42 : vector<1x64xf32> to vector<16x64xf32>
    %44 = arith.addf %41, %43 : vector<16x64xf32>
    %cst_20 = arith.constant 0.000000e+00 : f32
    %45 = vector.broadcast %cst_20 : f32 to vector<16x64xf32>
    %46 = arith.maximumf %44, %45 : vector<16x64xf32>
    %47 = vector.broadcast %5 : vector<16x1xf32> to vector<16x64xf32>
    %48 = arith.mulf %46, %47 : vector<16x64xf32>
    %cst_21 = arith.constant dense<0.000000e+00> : vector<64xf32>
    %49 = vector.multi_reduction <add>, %48, %cst_21 [0] : vector<16x64xf32> to vector<64xf32>
    %50 = vector.shape_cast %49 : vector<64xf32> to vector<1x64xf32>
    %cst_22 = arith.constant 1.000000e-01 : f32
    %51 = vector.broadcast %cst_22 : f32 to vector<1x64xf32>
    %52 = arith.mulf %50, %51 : vector<1x64xf32>
    %53 = vector.broadcast %52 : vector<1x64xf32> to vector<16x64xf32>
    %54 = arith.subf %46, %53 : vector<16x64xf32>
    %55 = arith.mulf %54, %54 : vector<16x64xf32>
    %56 = vector.broadcast %5 : vector<16x1xf32> to vector<16x64xf32>
    %57 = arith.mulf %55, %56 : vector<16x64xf32>
    %cst_23 = arith.constant dense<0.000000e+00> : vector<64xf32>
    %58 = vector.multi_reduction <add>, %57, %cst_23 [0] : vector<16x64xf32> to vector<64xf32>
    %59 = vector.shape_cast %58 : vector<64xf32> to vector<1x64xf32>
    %cst_24 = arith.constant 1.000000e-01 : f32
    %60 = vector.broadcast %cst_24 : f32 to vector<1x64xf32>
    %61 = arith.mulf %59, %60 : vector<1x64xf32>
    %c0_25 = arith.constant 0 : index
    %c0_26 = arith.constant 0 : index
    %62 = vector.load %arg7[%c0_25, %c0_26] : memref<1x64xf32, #tpu.memory_space<vmem>>, vector<1x64xf32>
    %cst_27 = arith.constant 1.000000e-01 : f32
    %63 = vector.broadcast %cst_27 : f32 to vector<1x64xf32>
    %64 = arith.addf %61, %63 : vector<1x64xf32>
    %65 = math.rsqrt %64 : vector<1x64xf32>
    %66 = arith.mulf %62, %65 : vector<1x64xf32>
    %c0_28 = arith.constant 0 : index
    %c0_29 = arith.constant 0 : index
    %67 = vector.load %arg8[%c0_28, %c0_29] : memref<1x64xf32, #tpu.memory_space<vmem>>, vector<1x64xf32>
    %68 = arith.mulf %52, %66 : vector<1x64xf32>
    %69 = arith.subf %67, %68 : vector<1x64xf32>
    %70 = vector.broadcast %66 : vector<1x64xf32> to vector<16x64xf32>
    %71 = arith.mulf %46, %70 : vector<16x64xf32>
    %72 = vector.broadcast %69 : vector<1x64xf32> to vector<16x64xf32>
    %73 = arith.addf %71, %72 : vector<16x64xf32>
    %c0_30 = arith.constant 0 : index
    %c0_31 = arith.constant 0 : index
    %74 = vector.load %arg9[%c0_30, %c0_31] : memref<64x32xf32, #tpu.memory_space<vmem>>, vector<64x32xf32>
    %cst_32 = arith.constant dense<0.000000e+00> : vector<16x32xf32>
    %75 = tpu.matmul %73, %74, %cst_32 {dimension_numbers = #tpu.dot_dimension_numbers<[1], [0], [0], [1], [0, 0, 1, 1], [], []>} : vector<16x64xf32>, vector<64x32xf32>, vector<16x32xf32> -> vector<16x32xf32>
    %c0_33 = arith.constant 0 : index
    %c0_34 = arith.constant 0 : index
    %76 = vector.load %arg10[%c0_33, %c0_34] : memref<1x32xf32, #tpu.memory_space<vmem>>, vector<1x32xf32>
    %77 = vector.broadcast %76 : vector<1x32xf32> to vector<16x32xf32>
    %78 = arith.addf %75, %77 : vector<16x32xf32>
    %cst_35 = arith.constant 0.000000e+00 : f32
    %79 = vector.broadcast %cst_35 : f32 to vector<16x32xf32>
    %80 = arith.maximumf %78, %79 : vector<16x32xf32>
    %81 = vector.broadcast %5 : vector<16x1xf32> to vector<16x32xf32>
    %82 = arith.mulf %80, %81 : vector<16x32xf32>
    %cst_36 = arith.constant dense<0.000000e+00> : vector<32xf32>
    %83 = vector.multi_reduction <add>, %82, %cst_36 [0] : vector<16x32xf32> to vector<32xf32>
    %84 = vector.shape_cast %83 : vector<32xf32> to vector<1x32xf32>
    %cst_37 = arith.constant 1.000000e-01 : f32
    %85 = vector.broadcast %cst_37 : f32 to vector<1x32xf32>
    %86 = arith.mulf %84, %85 : vector<1x32xf32>
    %87 = vector.broadcast %86 : vector<1x32xf32> to vector<16x32xf32>
    %88 = arith.subf %80, %87 : vector<16x32xf32>
    %89 = arith.mulf %88, %88 : vector<16x32xf32>
    %90 = vector.broadcast %5 : vector<16x1xf32> to vector<16x32xf32>
    %91 = arith.mulf %89, %90 : vector<16x32xf32>
    %cst_38 = arith.constant dense<0.000000e+00> : vector<32xf32>
    %92 = vector.multi_reduction <add>, %91, %cst_38 [0] : vector<16x32xf32> to vector<32xf32>
    %93 = vector.shape_cast %92 : vector<32xf32> to vector<1x32xf32>
    %cst_39 = arith.constant 1.000000e-01 : f32
    %94 = vector.broadcast %cst_39 : f32 to vector<1x32xf32>
    %95 = arith.mulf %93, %94 : vector<1x32xf32>
    %c0_40 = arith.constant 0 : index
    %c0_41 = arith.constant 0 : index
    %96 = vector.load %arg11[%c0_40, %c0_41] : memref<1x32xf32, #tpu.memory_space<vmem>>, vector<1x32xf32>
    %cst_42 = arith.constant 1.000000e-01 : f32
    %97 = vector.broadcast %cst_42 : f32 to vector<1x32xf32>
    %98 = arith.addf %95, %97 : vector<1x32xf32>
    %99 = math.rsqrt %98 : vector<1x32xf32>
    %100 = arith.mulf %96, %99 : vector<1x32xf32>
    %c0_43 = arith.constant 0 : index
    %c0_44 = arith.constant 0 : index
    %101 = vector.load %arg12[%c0_43, %c0_44] : memref<1x32xf32, #tpu.memory_space<vmem>>, vector<1x32xf32>
    %102 = arith.mulf %86, %100 : vector<1x32xf32>
    %103 = arith.subf %101, %102 : vector<1x32xf32>
    %104 = vector.broadcast %100 : vector<1x32xf32> to vector<16x32xf32>
    %105 = arith.mulf %80, %104 : vector<16x32xf32>
    %106 = vector.broadcast %103 : vector<1x32xf32> to vector<16x32xf32>
    %107 = arith.addf %105, %106 : vector<16x32xf32>
    %c0_45 = arith.constant 0 : index
    %c0_46 = arith.constant 0 : index
    %108 = vector.load %arg13[%c0_45, %c0_46] : memref<32x1xf32, #tpu.memory_space<vmem>>, vector<32x1xf32>
    %cst_47 = arith.constant dense<0.000000e+00> : vector<16x1xf32>
    %109 = tpu.matmul %107, %108, %cst_47 {dimension_numbers = #tpu.dot_dimension_numbers<[1], [0], [0], [1], [0, 0, 1, 1], [], []>} : vector<16x32xf32>, vector<32x1xf32>, vector<16x1xf32> -> vector<16x1xf32>
    %c0_48 = arith.constant 0 : index
    %c0_49 = arith.constant 0 : index
    %110 = vector.load %arg14[%c0_48, %c0_49] : memref<1x1xf32, #tpu.memory_space<vmem>>, vector<1x1xf32>
    %111 = vector.broadcast %110 : vector<1x1xf32> to vector<16x1xf32>
    %112 = arith.addf %109, %111 : vector<16x1xf32>
    %c0_50 = arith.constant 0 : index
    %c0_51 = arith.constant 0 : index
    %113 = vector.load %arg15[%c0_50, %c0_51] : memref<16x1xf32, #tpu.memory_space<vmem>>, vector<16x1xf32>
    tpu.vector_store %arg15[%c0_50, %c0_51], %112 {strides = array<i32>} : memref<16x1xf32, #tpu.memory_space<vmem>>, vector<16x1xf32>,
    return
  }
}

</mosaic_0001>

<bundles_post_ra>
// kernel: maml_mlp_decoder_forward.1
= control target key start
LH: loop header
LB: loop body
LE: loop exit
PB: predicated region body
PF: predicated region fallthrough
CT: control target
= control target key end

     0   :  { %vm71_vm0 = vcmask 261120   ;;  %v54_v6 = vlaneseq  ;;  %v416_v14 = vmov 0.0   ;;  %vm105_vm2 = vcmask 523264   ;;  %s664_s1 = inlined_call_operand.vmem [shape: f32[32,64], index: 1, kind: input, shape index: {}]   ;;  %s665_s2 = inlined_call_operand.vmem [shape: f32[1,64], index: 2, kind: input, shape index: {}]   ;;  %s666_s0 = inlined_call_operand.vmem [shape: f32[16,32], index: 0, kind: input, shape index: {}]   ;;  %s667_s6 = inlined_call_operand.vmem [shape: f32[1,64], index: 6, kind: input, shape index: {}]   ;;  %s668_s5 = inlined_call_operand.vmem [shape: f32[64,64], index: 5, kind: input, shape index: {}]   ;;  %s669_s3 = inlined_call_operand.vmem [shape: f32[1,64], index: 3, kind: input, shape index: {}]   ;;  %s670_s4 = inlined_call_operand.vmem [shape: f32[1,64], index: 4, kind: input, shape index: {}]   ;;  %s671_s10 = inlined_call_operand.vmem [shape: f32[1,32], index: 10, kind: input, shape index: {}]   ;;  %s672_s9 = inlined_call_operand.vmem [shape: f32[64,32], index: 9, kind: input, shape index: {}]   ;;  %s673_s7 = inlined_call_operand.vmem [shape: f32[1,64], index: 7, kind: input, shape index: {}]   ;;  %s674_s8 = inlined_call_operand.vmem [shape: f32[1,64], index: 8, kind: input, shape index: {}]   ;;  %s675_s13 = inlined_call_operand.vmem [shape: f32[32,1], index: 13, kind: input, shape index: {}]   ;;  %s676_s14 = inlined_call_operand.<no memory space> [shape: f32[1,1], index: 14, kind: input, shape index: {}]   ;;  %s677_s11 = inlined_call_operand.vmem [shape: f32[1,32], index: 11, kind: input, shape index: {}]   ;;  %s678_s12 = inlined_call_operand.vmem [shape: f32[1,32], index: 12, kind: input, shape index: {}]   ;;  %s679_s15 = inlined_call_operand.vmem [shape: f32[16,1], index: 15, kind: output, shape index: {}]  }
   0x1   :  { %v66_v0 = vld [vmem:[%s664_s1 + $0x18] sm:$0xff]  ;;  %v65_v1 = vld [vmem:[%s664_s1 + $0x10] sm:$0xff]  ;;  %v64_v2 = vld [vmem:[%s664_s1 + $0x8] sm:$0xff]  ;;  %vm389_vm12 = vcmask 7168  }
   0x2   :  { %90 = vmatpush.msra.mxu0 %v66_v0  ;;  %v63_v3 = vld [vmem:[%s664_s1] sm:$0xff]  ;;  %v53_v5 = vld [vmem:[%s666_s0 + $0x8] sm:$0xff]  ;;  %v55_v7 = vshrl.u32 %v54_v6, 7  ;;  %v165_v34 = vld [vmem:[%s668_s5 + $0x38] sm:$0xff] }
   0x3   :  { %v52_v4 = vld [vmem:[%s666_s0] sm:$0xff]  ;;  %184 = vmatpush.msra.mxu1 %v165_v34  ;;  %v164_v38 = vld [vmem:[%s668_s5 + $0x30] sm:$0xff]  ;;  %v163_v40 = vld [vmem:[%s668_s5 + $0x28] sm:$0xff] }
   0x4   :  { %91 = vmatpush.msra.mxu0 %v65_v1  ;;  %v406_v9 = vld [vmem:[%s665_s2] ss:$0 sm:$0xff]  ;;  %v56_v10 = vadd.s32 8, %v55_v7  ;;  %v161_v44 = vld [vmem:[%s668_s5 + $0x18] sm:$0xff]  ;;  %v160_v46 = vld [vmem:[%s668_s5 + $0x10] sm:$0xff] }
   0x5   :  { %185 = vmatpush.msra.mxu1 %v164_v38  ;;  %v162_v42 = vld [vmem:[%s668_s5 + $0x20] sm:$0xff]  ;;  %v159_v47 = vld [vmem:[%s668_s5 + $0x8] sm:$0xff] }
   0x6   :  { %92 = vmatpush.msra.mxu0 %v64_v2  ;;  %vm58_vm1 = vcmp.lt.s32.totalorder %v56_v10, 10  ;;  %v158_v49 = vld [vmem:[%s668_s5] sm:$0xff] }
   0x7   :  { %v520_v15 = vsel %vm58_vm1, 1.0, %v416_v14  ;;  %186 = vmatpush.msra.mxu1 %v163_v40  ;;  %v132_v58 = vld [vmem:[%s669_s3] sm:$0x1] }
   0x8   :  { %93 = vmatpush.msra.mxu0 %v63_v3  ;;  %v145_v62 = vld [vmem:[%s670_s4] sm:$0x1] }
   0x9   :  { %397 = vmatmul.msk.f32.vlgmr.msra.gmra.mxu0 %vm71_vm0, %v52_v4  ;;  %187 = vmatpush.msra.mxu1 %v162_v42 }
   0xb   :  { %188 = vmatpush.msra.mxu1 %v161_v44  ;;  %v256_v44 = vld [vmem:[%s672_s9 + $0x8] sm:$0xff] }
   0xd   :  { %189 = vmatpush.msra.mxu1 %v160_v46  ;;  %v255_v46 = vld [vmem:[%s672_s9] sm:$0xff] }
   0xf   :  { %190 = vmatpush.msra.mxu1 %v159_v47 }
  0x11   :  { %398 = vmatmul.msk.f32.gmra.mxu0 %vm71_vm0, %v53_v5  ;;  %191 = vmatpush.msra.mxu1 %v158_v49 }
  0x86   :  { %v95_v8 = vpop.f32.mrf.mxu0 }
  0x87   :  { %v96_v11 = vadd.f32 %v406_v9, %v95_v8  ;;  %v407_v8 = vld [vmem:[%s667_s6] ss:$0 sm:$0xff] }
  0x89   :  { %v522_v16 = vmax.f32 %v96_v11, 0.0 }
  0x8b   :  { %v106_v19 = vsel %vm105_vm2, %v522_v16, 0.0 }
  0x8e   :  { %v98_v12 = vpop.f32.mrf.mxu0 }
  0x8f   :  { %v99_v13 = vadd.f32 %v406_v9, %v98_v12 }
  0x91   :  { %v524_v17 = vmax.f32 %v99_v13, 0.0 }
  0x93   :  { %v104_v18 = vmul.f32 %v520_v15, %v524_v17 }
  0x95   :  { %v107_v20 = vsel %vm105_vm2, %v104_v18, 0.0 }
  0x96   :  { %v108_v21 = vadd.f32 %v107_v20, %v106_v19 }
  0x98   :  { %v109_v22 = vrot.slane %v108_v21, 4 }
  0x9a   :  { %v110_v23 = vadd.f32 %v109_v22, %v108_v21 }
  0x9c   :  { %v111_v24 = vrot.slane %v110_v23, 2 }
  0x9e   :  { %v112_v25 = vadd.f32 %v111_v24, %v110_v23 }
  0xa0   :  { %v113_v26 = vrot.slane %v112_v25, 1 }
  0xa2   :  { %v114_v27 = vadd.f32 %v113_v26, %v112_v25 }
  0xa4   :  { %v115_v28 = vmul.f32 0.1, %v114_v27 }
  0xa6   :  { %v116_v29 = vsub.f32 %v522_v16, %v115_v28  ;;  %v117_v30 = vsub.f32 %v524_v17, %v115_v28 }
  0xa8   :  { %v118_v31 = vmul.f32 %v116_v29, %v116_v29  ;;  %v119_v32 = vmul.f32 %v117_v30, %v117_v30 }
  0xaa   :  { %v121_v33 = vmul.f32 %v520_v15, %v119_v32  ;;  %v122_v35 = vsel %vm105_vm2, %v118_v31, 0.0  ;;  %v262_v31 = vld [vmem:[%s672_s9 + $0x38] sm:$0xff] }
  0xab   :  { %281 = vmatpush.msra.mxu2 %v262_v31 }
  0xac   :  { %v123_v36 = vsel %vm105_vm2, %v121_v33, 0.0 }
  0xad   :  { %v124_v37 = vadd.f32 %v123_v36, %v122_v35  ;;  %v261_v35 = vld [vmem:[%s672_s9 + $0x30] sm:$0xff] }
  0xae   :  { %282 = vmatpush.msra.mxu2 %v261_v35 }
  0xaf   :  { %v125_v39 = vrot.slane %v124_v37, 4 }
  0xb1   :  { %v126_v41 = vadd.f32 %v125_v39, %v124_v37  ;;  %v260_v37 = vld [vmem:[%s672_s9 + $0x28] sm:$0xff]  ;;  %v259_v39 = vld [vmem:[%s672_s9 + $0x20] sm:$0xff] }
  0xb2   :  { %283 = vmatpush.msra.mxu2 %v260_v37 }
  0xb3   :  { %v127_v43 = vrot.slane %v126_v41, 2 }
  0xb4   :  { %284 = vmatpush.msra.mxu2 %v259_v39 }
  0xb5   :  { %v128_v45 = vadd.f32 %v127_v43, %v126_v41  ;;  %v258_v41 = vld [vmem:[%s672_s9 + $0x18] sm:$0xff]  ;;  %v257_v43 = vld [vmem:[%s672_s9 + $0x10] sm:$0xff] }
  0xb6   :  { %285 = vmatpush.msra.mxu2 %v258_v41 }
  0xb7   :  { %v129_v48 = vrot.slane %v128_v45, 1 }
  0xb8   :  { %286 = vmatpush.msra.mxu2 %v257_v43 }
  0xb9   :  { %v130_v50 = vadd.f32 %v129_v48, %v128_v45 }
  0xba   :  { %287 = vmatpush.msra.mxu2 %v256_v44 }
  0xbb   :  { %v131_v51 = vmul.f32 0.1, %v130_v50 }
  0xbc   :  { %288 = vmatpush.msra.mxu2 %v255_v46 }
  0xbd   :  { %v133_v52 = vadd.f32 0.1, %v131_v51 }
  0xbf   :  { %410 = vrsqrt.f32 %v133_v52  ;;  %vm140_vm4 = vweird.f32 %v133_v52 }
  0xc5   :  { %v411_v53 = vpop.eup %410 }
  0xc6   :  { %v135_v54 = vmul.f32 %v411_v53, %v133_v52  ;;  %vm141_vm3 = vweird.f32 %v411_v53 }
  0xc7   :  { %vm142_vm5 = vmor %vm140_vm4, %vm141_vm3 }
  0xc8   :  { %v136_v55 = vmul.f32 %v411_v53, %v135_v54 }
  0xca   :  { %v137_v56 = vmul.f32 0.5, %v136_v55  ;;  %v229_v55 = vld [vmem:[%s673_s7] sm:$0x1] }
  0xcc   :  { %v138_v57 = vsub.f32 1.5, %v137_v56 }
  0xce   :  { %v139_v59 = vmul.f32 %v411_v53, %v138_v57 }
  0xd0   :  { %v143_v60 = vsel %vm142_vm5, %v411_v53, %v139_v59  ;;  %v242_v59 = vld [vmem:[%s674_s8] sm:$0x1] }
  0xd1   :  { %v144_v61 = vmul.f32 %v143_v60, %v132_v58 }
  0xd3   :  { %v149_v63 = vperm.slane %v144_v61, 0  ;;  %v146_v0 = vmul.f32 %v144_v61, %v115_v28 }
  0xd5   :  { %v147_v1 = vsub.f32 %v145_v62, %v146_v0  ;;  %v151_v2 = vmul.f32 %v149_v63, %v522_v16  ;;  %v152_v5 = vmul.f32 %v149_v63, %v524_v17 }
  0xd7   :  { %v154_v3 = vperm.slane %v147_v1, 0 }
  0xd9   :  { %v156_v4 = vadd.f32 %v154_v3, %v151_v2  ;;  %v157_v6 = vadd.f32 %v154_v3, %v152_v5  ;;  %v408_v5 = vld [vmem:[%s671_s10] ss:$0 sm:$0xff] }
  0xdb   :  { %399 = vmatmul.msk.f32.vlgmr.msra.gmra.mxu1 %vm105_vm2, %v156_v4 }
  0xe3   :  { %400 = vmatmul.msk.f32.gmra.mxu1 %vm105_vm2, %v157_v6 }
 0x158   :  { %v193_v7 = vpop.f32.mrf.mxu1 }
 0x159   :  { %v194_v9 = vadd.f32 %v407_v8, %v193_v7 }
 0x15b   :  { %v573_v12 = vmax.f32 %v194_v9, 0.0 }
 0x15d   :  { %v203_v16 = vsel %vm105_vm2, %v573_v12, 0.0 }
 0x160   :  { %v196_v10 = vpop.f32.mrf.mxu1 }
 0x161   :  { %v197_v11 = vadd.f32 %v407_v8, %v196_v10 }
 0x163   :  { %v575_v13 = vmax.f32 %v197_v11, 0.0 }
 0x165   :  { %v202_v14 = vmul.f32 %v520_v15, %v575_v13 }
 0x167   :  { %v204_v17 = vsel %vm105_vm2, %v202_v14, 0.0 }
 0x168   :  { %v205_v18 = vadd.f32 %v204_v17, %v203_v16 }
 0x16a   :  { %v206_v19 = vrot.slane %v205_v18, 4 }
 0x16c   :  { %v207_v20 = vadd.f32 %v206_v19, %v205_v18 }
 0x16e   :  { %v208_v21 = vrot.slane %v207_v20, 2 }
 0x170   :  { %v209_v22 = vadd.f32 %v208_v21, %v207_v20 }
 0x172   :  { %v210_v23 = vrot.slane %v209_v22, 1 }
 0x174   :  { %v211_v24 = vadd.f32 %v210_v23, %v209_v22 }
 0x176   :  { %v212_v25 = vmul.f32 0.1, %v211_v24 }
 0x178   :  { %v213_v26 = vsub.f32 %v573_v12, %v212_v25  ;;  %v214_v27 = vsub.f32 %v575_v13, %v212_v25 }
 0x17a   :  { %v215_v28 = vmul.f32 %v213_v26, %v213_v26  ;;  %v216_v29 = vmul.f32 %v214_v27, %v214_v27 }
 0x17c   :  { %v218_v30 = vmul.f32 %v520_v15, %v216_v29  ;;  %v219_v32 = vsel %vm105_vm2, %v215_v28, 0.0 }
 0x17e   :  { %v220_v33 = vsel %vm105_vm2, %v218_v30, 0.0 }
 0x17f   :  { %v221_v34 = vadd.f32 %v220_v33, %v219_v32 }
 0x181   :  { %v222_v36 = vrot.slane %v221_v34, 4 }
 0x183   :  { %v223_v38 = vadd.f32 %v222_v36, %v221_v34  ;;  %v355_v34 = vld [vmem:[%s675_s13 + $0x18] sm:$0xff]  ;;  %v354_v36 = vld [vmem:[%s675_s13 + $0x10] sm:$0xff] }
 0x184   :  { %378 = vmatpush.msra.mxu3 %v355_v34 }
 0x185   :  { %v224_v40 = vrot.slane %v223_v38, 2 }
 0x186   :  { %379 = vmatpush.msra.mxu3 %v354_v36 }
 0x187   :  { %v225_v42 = vadd.f32 %v224_v40, %v223_v38  ;;  %v352_v38 = vld [vmem:[%s675_s13] sm:$0xff] }
 0x189   :  { %v226_v45 = vrot.slane %v225_v42, 1 }
 0x18b   :  { %v227_v47 = vadd.f32 %v226_v45, %v225_v42  ;;  %v20_v42 = vstv %s676_s14 }
 0x18c   :  { %21 = vst [vmem:[#allocation2] sm:$0x1] %v20_v42 }
 0x18d   :  { %v228_v48 = vmul.f32 0.1, %v227_v47 }
 0x18f   :  { %v230_v49 = vadd.f32 0.1, %v228_v48  ;;  %v326_v48 = vld [vmem:[%s677_s11] sm:$0x1] }
 0x191   :  { %412 = vrsqrt.f32 %v230_v49  ;;  %vm237_vm7 = vweird.f32 %v230_v49 }
 0x197   :  { %v413_v50 = vpop.eup %412 }
 0x198   :  { %v232_v51 = vmul.f32 %v413_v50, %v230_v49  ;;  %vm238_vm6 = vweird.f32 %v413_v50 }
 0x199   :  { %vm239_vm8 = vmor %vm237_vm7, %vm238_vm6 }
 0x19a   :  { %v233_v52 = vmul.f32 %v413_v50, %v232_v51 }
 0x19c   :  { %v234_v53 = vmul.f32 0.5, %v233_v52  ;;  %v339_v52 = vld [vmem:[%s678_s12] sm:$0x1] }
 0x19e   :  { %v235_v54 = vsub.f32 1.5, %v234_v53 }
 0x1a0   :  { %v236_v56 = vmul.f32 %v413_v50, %v235_v54 }
 0x1a2   :  { %v240_v57 = vsel %vm239_vm8, %v413_v50, %v236_v56 }
 0x1a3   :  { %v241_v58 = vmul.f32 %v240_v57, %v229_v55 }
 0x1a5   :  { %v246_v60 = vperm.slane %v241_v58, 0  ;;  %v243_v61 = vmul.f32 %v241_v58, %v212_v25 }
 0x1a7   :  { %v244_v62 = vsub.f32 %v242_v59, %v243_v61  ;;  %v248_v63 = vmul.f32 %v246_v60, %v573_v12  ;;  %v249_v2 = vmul.f32 %v246_v60, %v575_v13  ;;  %v409_v61 = vld [vmem:[#allocation2] ss:$0 sm:$0xff] }
 0x1a9   :  { %v251_v0 = vperm.slane %v244_v62, 0 }
 0x1ab   :  { %v253_v1 = vadd.f32 %v251_v0, %v248_v63  ;;  %v254_v3 = vadd.f32 %v251_v0, %v249_v2 }
 0x1ad   :  { %401 = vmatmul.msk.f32.vlgmr.msra.gmra.mxu2 %vm105_vm2, %v253_v1 }
 0x1b5   :  { %402 = vmatmul.msk.f32.gmra.mxu2 %vm105_vm2, %v254_v3 }
 0x230   :  { %v290_v4 = vpop.f32.mrf.mxu2 }
 0x231   :  { %v291_v6 = vadd.f32 %v408_v5, %v290_v4 }
 0x233   :  { %v296_v9 = vmax.f32 %v291_v6, 0.0 }
 0x235   :  { %v300_v12 = vsel %vm71_vm0, %v296_v9, 0.0 }
 0x238   :  { %v293_v7 = vpop.f32.mrf.mxu2 }
 0x239   :  { %v294_v8 = vadd.f32 %v408_v5, %v293_v7 }
 0x23b   :  { %v624_v10 = vmax.f32 %v294_v8, 0.0 }
 0x23d   :  { %v299_v11 = vmul.f32 %v520_v15, %v624_v10 }
 0x23f   :  { %v301_v13 = vsel %vm71_vm0, %v299_v11, 0.0 }
 0x240   :  { %v302_v14 = vadd.f32 %v301_v13, %v300_v12 }
 0x242   :  { %v303_v16 = vrot.slane %v302_v14, 4 }
 0x244   :  { %v304_v17 = vadd.f32 %v303_v16, %v302_v14 }
 0x246   :  { %v305_v18 = vrot.slane %v304_v17, 2 }
 0x248   :  { %v306_v19 = vadd.f32 %v305_v18, %v304_v17 }
 0x24a   :  { %v307_v20 = vrot.slane %v306_v19, 1 }
 0x24c   :  { %v308_v21 = vadd.f32 %v307_v20, %v306_v19 }
 0x24e   :  { %v309_v22 = vmul.f32 0.1, %v308_v21 }
 0x250   :  { %v310_v23 = vsub.f32 %v296_v9, %v309_v22  ;;  %v311_v24 = vsub.f32 %v624_v10, %v309_v22 }
 0x252   :  { %v312_v25 = vmul.f32 %v310_v23, %v310_v23  ;;  %v313_v26 = vmul.f32 %v311_v24, %v311_v24 }
 0x254   :  { %v315_v27 = vmul.f32 %v520_v15, %v313_v26  ;;  %v316_v28 = vsel %vm71_vm0, %v312_v25, 0.0  ;;  %v353_v15 = vld [vmem:[%s675_s13 + $0x8] sm:$0xff] }
 0x255   :  { %380 = vmatpush.msra.mxu3 %v353_v15 }
 0x256   :  { %v317_v29 = vsel %vm71_vm0, %v315_v27, 0.0 }
 0x257   :  { %v318_v30 = vadd.f32 %v317_v29, %v316_v28  ;;  %381 = vmatpush.msra.mxu3 %v352_v38 }
 0x259   :  { %v319_v31 = vrot.slane %v318_v30, 4 }
 0x25b   :  { %v320_v32 = vadd.f32 %v319_v31, %v318_v30 }
 0x25d   :  { %v321_v33 = vrot.slane %v320_v32, 2 }
 0x25f   :  { %v322_v35 = vadd.f32 %v321_v33, %v320_v32 }
 0x261   :  { %v323_v37 = vrot.slane %v322_v35, 1 }
 0x263   :  { %v324_v39 = vadd.f32 %v323_v37, %v322_v35 }
 0x265   :  { %v325_v40 = vmul.f32 0.1, %v324_v39 }
 0x267   :  { %v327_v41 = vadd.f32 0.1, %v325_v40 }
 0x269   :  { %414 = vrsqrt.f32 %v327_v41  ;;  %vm334_vm10 = vweird.f32 %v327_v41 }
 0x26f   :  { %v415_v43 = vpop.eup %414 }
 0x270   :  { %v329_v44 = vmul.f32 %v415_v43, %v327_v41  ;;  %vm335_vm9 = vweird.f32 %v415_v43 }
 0x271   :  { %vm336_vm11 = vmor %vm334_vm10, %vm335_vm9 }
 0x272   :  { %v330_v45 = vmul.f32 %v415_v43, %v329_v44 }
 0x274   :  { %v331_v46 = vmul.f32 0.5, %v330_v45 }
 0x276   :  { %v332_v47 = vsub.f32 1.5, %v331_v46 }
 0x278   :  { %v333_v49 = vmul.f32 %v415_v43, %v332_v47 }
 0x27a   :  { %v337_v50 = vsel %vm336_vm11, %v415_v43, %v333_v49 }
 0x27b   :  { %v338_v51 = vmul.f32 %v337_v50, %v326_v48 }
 0x27d   :  { %v343_v53 = vperm.slane %v338_v51, 0  ;;  %v340_v54 = vmul.f32 %v338_v51, %v309_v22 }
 0x27f   :  { %v341_v55 = vsub.f32 %v339_v52, %v340_v54  ;;  %v345_v56 = vmul.f32 %v343_v53, %v296_v9  ;;  %v346_v59 = vmul.f32 %v343_v53, %v624_v10 }
 0x281   :  { %v348_v57 = vperm.slane %v341_v55, 0 }
 0x283   :  { %v350_v58 = vadd.f32 %v348_v57, %v345_v56  ;;  %v351_v60 = vadd.f32 %v348_v57, %v346_v59 }
 0x285   :  { %403 = vmatmul.msk.f32.vlgmr.msra.gmra.mxu3 %vm71_vm0, %v350_v58 }
 0x28d   :  { %404 = vmatmul.msk.f32.gmra.mxu3 %vm71_vm0, %v351_v60 }
 0x308   :  { %v383_v62 = vpop.f32.mrf.mxu3 }
 0x309   :  { %v384_v63 = vadd.f32 %v409_v61, %v383_v62 }
 0x30b   :  { %390 = vst.msk [vmem:[%s679_s15] sm:$0xff] %vm389_vm12, %v384_v63 }
 0x310   :  { %v386_v0 = vpop.f32.mrf.mxu3 }
 0x311   :  { %v387_v1 = vadd.f32 %v409_v61, %v386_v0 }
 0x313   :  { %391 = vst.msk [vmem:[%s679_s15 + $0x8] sm:$0xff] %vm389_vm12, %v387_v1 }

</bundles_post_ra>
